<compile_context>
chip_gen: v7x
topology: tpu7x:2x2x1
jax: 0.10.0
libtpu: 0.0.40
codegen_flags: <defaults>
</compile_context>

<pallas_src>
import functools

import jax
import jax.numpy as jnp
from jax.experimental import pallas as pl
from jax.experimental.pallas import tpu as pltpu


def _pddm_kernel(xp_ref, w_spd_ref, b_spd_ref, w_s_ref, b_s_ref, out_ref):
    """One row-tile of output pixels.

    xp_ref : (TP, 4C) packed 2x2-phase slices, columns = [s00|s10|s01|s11].
    Fuses space-to-depth 1x1 conv, 2x2 max-pool, sigmoid gate and the FMA.
    """
    xp = xp_ref[...]                                   # (TP, 4C) f32
    c = xp.shape[-1] // 4

    # Single MXU push with K=4C: (TP, 4C) x (4C, C).
    spd = (jnp.dot(xp, w_spd_ref[...], preferred_element_type=jnp.float32)
           + b_spd_ref[...])                           # (TP, C)

    # 2x2 max-pool == elementwise max over the four phase column blocks.
    s00 = xp[:, 0 * c:1 * c]
    s10 = xp[:, 1 * c:2 * c]
    s01 = xp[:, 2 * c:3 * c]
    s11 = xp[:, 3 * c:4 * c]
    max_f = jnp.maximum(jnp.maximum(s00, s10), jnp.maximum(s01, s11))  # (TP, C)

    # C -> 1 gate "conv": VPU multiply + lane reduction (skip a 1-wide matmul).
    s_w = jnp.sum(max_f * w_s_ref[...], axis=-1, keepdims=True) + b_s_ref[...]
    gate = jax.nn.sigmoid(s_w)                         # (TP, 1), exp/recip on EUP

    out_ref[...] = spd * gate + max_f


@functools.partial(jax.jit, static_argnames=("tile_p",))
def pddm_forward(x, w_spd, b_spd, w_s, b_s, *, tile_p=512):
    """x: (N, C, H, W) float32 NCHW.  Returns (N, C, H/2, W/2) float32.

    w_spd: (4C, C)  -- PyTorch Conv2d(4C, C, 1) weight, pre-transposed to
                       (C_in, C_out); input-channel order = torch.cat order.
    b_spd: (C,)     w_s: (C, 1)     b_s: (1,)
    """
    n, c, h, w = x.shape
    if h % 2 or w % 2:
        # The PyTorch module also requires even spatial dims (concat mismatch).
        raise ValueError("PDDM_ requires even H and W")
    ho, wo = h // 2, w // 2
    p = n * ho * wo

    x = x.astype(jnp.float32)

    # Single layout pass: NCHW -> (N, Ho, 2dh, Wo, 2dw, C-last) -> (P, 4C).
    # Flattened (dw, dh, C) column order = [s00 | s10 | s01 | s11].
    xp = x.reshape(n, c, ho, 2, wo, 2)                 # free split of H, W
    xp = jnp.transpose(xp, (0, 2, 4, 5, 3, 1))         # (N, Ho, Wo, dw, dh, C)
    xp = xp.reshape(p, 4 * c)                          # free merge

    # Tile-size clamp: fit (in + out) double-buffered in ~16 MiB of VMEM
    # (safe on v7x's 64 MiB too) and never request a block >> the array.
    bytes_per_row = 40 * c                             # 2*(4C + C) * 4B
    budget_rows = max(8, (16 * 1024 * 1024) // bytes_per_row)
    tp = min(tile_p, budget_rows, ((p + 7) // 8) * 8)
    tp = max(8, (tp // 8) * 8)

    grid = (pl.cdiv(p, tp),)

    w_spd_f = w_spd.astype(jnp.float32)                # (4C, C)
    b_spd_2d = b_spd.reshape(1, c).astype(jnp.float32)
    w_s_row = w_s.reshape(1, c).astype(jnp.float32)    # (C,1) -> (1,C)
    b_s_2d = b_s.reshape(1, 1).astype(jnp.float32)

    full = lambda shape: pl.BlockSpec(shape, lambda i: (0, 0))

    out_rows = pl.pallas_call(
        _pddm_kernel,
        out_shape=jax.ShapeDtypeStruct((p, c), jnp.float32),
        grid_spec=pltpu.PrefetchScalarGridSpec(
            num_scalar_prefetch=0,
            grid=grid,
            in_specs=[
                pl.BlockSpec((tp, 4 * c), lambda i: (i, 0)),
                full((4 * c, c)),
                full((1, c)),
                full((1, c)),
                full((1, 1)),
            ],
            out_specs=pl.BlockSpec((tp, c), lambda i: (i, 0)),
        ),
        compiler_params=pltpu.CompilerParams(
            dimension_semantics=("parallel",)),
    )(xp, w_spd_f, b_spd_2d, w_s_row, b_s_2d)

    # TODO(synk): if the consumer accepts NHWC, return out_rows.reshape(n,ho,wo,c)
    # directly and drop this final transpose pass.
    out = out_rows.reshape(n, ho, wo, c)
    return jnp.transpose(out, (0, 3, 1, 2))            # back to NCHW


def _reference(x, w_spd, b_spd, w_s, b_s):
    """Pure-JAX reference mirroring the PyTorch forward."""
    s00 = x[:, :, 0::2, 0::2]
    s10 = x[:, :, 1::2, 0::2]
    s01 = x[:, :, 0::2, 1::2]
    s11 = x[:, :, 1::2, 1::2]
    spd_in = jnp.concatenate([s00, s10, s01, s11], axis=1)        # (N, 4C, Ho, Wo)
    spd = jnp.einsum("nihw,io->nohw", spd_in, w_spd) + b_spd[None, :, None, None]
    max_f = jnp.maximum(jnp.maximum(s00, s10), jnp.maximum(s01, s11))
    s_w = jnp.einsum("nihw,io->nohw", max_f, w_s) + b_s[None, :, None, None]
    s = jax.nn.sigmoid(s_w)
    return spd * s + max_f


if __name__ == "__main__":
    key = jax.random.PRNGKey(0)
    k_x, k_w1, k_b1, k_w2, k_b2 = jax.random.split(key, 5)

    N, C, H, W = 2, 4, 16, 16
    x = jax.random.normal(k_x, (N, C, H, W), dtype=jnp.float32)

    # PyTorch conv weight (Cout, Cin, 1, 1) is stored here pre-transposed as
    # (Cin, Cout) for the matmul form.
    w_spd = jax.random.normal(k_w1, (4 * C, C), dtype=jnp.float32) * 0.1
    b_spd = jax.random.normal(k_b1, (C,), dtype=jnp.float32) * 0.1
    w_s = jax.random.normal(k_w2, (C, 1), dtype=jnp.float32) * 0.1
    b_s = jax.random.normal(k_b2, (1,), dtype=jnp.float32) * 0.1

    out = pddm_forward(x, w_spd, b_spd, w_s, b_s)
    out = jax.block_until_ready(out)

    ref = _reference(x, w_spd, b_spd, w_s, b_s)
    assert out.shape == (N, C, H // 2, W // 2), out.shape
    assert jnp.allclose(out, ref, atol=1e-5, rtol=1e-5), "mismatch vs reference"

    print("KERNEL_OK")
</pallas_src>

<mosaic_0001>
module attributes {stable_mosaic.version = 11 : i64} {
  func.func @_pddm_kernel(%arg0: i32, %arg1: memref<128x16xf32, #tpu.memory_space<vmem>>, %arg2: memref<16x4xf32, #tpu.memory_space<vmem>>, %arg3: memref<1x4xf32, #tpu.memory_space<vmem>>, %arg4: memref<1x4xf32, #tpu.memory_space<vmem>>, %arg5: memref<1x1xf32, #tpu.memory_space<vmem>>, %arg6: memref<128x4xf32, #tpu.memory_space<vmem>>) attributes {dimension_semantics = [#tpu.dimension_semantics<parallel>], iteration_bounds = array<i64: 1>, scalar_prefetch = 0 : i64, scratch_operands = 0 : i64, tpu.core_type = #tpu.core_type<tc>, window_params = [{transform_indices = @transform_0, window_bounds = array<i64: 128, 16>}, {pipeline_mode = #tpu.pipeline_mode<synchronous>, transform_indices = @transform_1, window_bounds = array<i64: 16, 4>}, {pipeline_mode = #tpu.pipeline_mode<synchronous>, transform_indices = @transform_2, window_bounds = array<i64: 1, 4>}, {pipeline_mode = #tpu.pipeline_mode<synchronous>, transform_indices = @transform_3, window_bounds = array<i64: 1, 4>}, {pipeline_mode = #tpu.pipeline_mode<synchronous>, transform_indices = @transform_4, window_bounds = array<i64: 1, 1>}, {transform_indices = @transform_5, window_bounds = array<i64: 128, 4>}]} {
    %c0 = arith.constant 0 : index
    %c0_0 = arith.constant 0 : index
    %0 = vector.load %arg1[%c0, %c0_0] : memref<128x16xf32, #tpu.memory_space<vmem>>, vector<128x16xf32>
    %c0_1 = arith.constant 0 : index
    %c0_2 = arith.constant 0 : index
    %1 = vector.load %arg2[%c0_1, %c0_2] : memref<16x4xf32, #tpu.memory_space<vmem>>, vector<16x4xf32>
    %cst = arith.constant dense<0.000000e+00> : vector<128x4xf32>
    %2 = tpu.matmul %0, %1, %cst {dimension_numbers = #tpu.dot_dimension_numbers<[1], [0], [0], [1], [0, 0, 1, 1], [], []>} : vector<128x16xf32>, vector<16x4xf32>, vector<128x4xf32> -> vector<128x4xf32>
    %c0_3 = arith.constant 0 : index
    %c0_4 = arith.constant 0 : index
    %3 = vector.load %arg3[%c0_3, %c0_4] : memref<1x4xf32, #tpu.memory_space<vmem>>, vector<1x4xf32>
    %4 = vector.broadcast %3 : vector<1x4xf32> to vector<128x4xf32>
    %5 = arith.addf %2, %4 : vector<128x4xf32>
    %6 = vector.extract_strided_slice %0 {offsets = [0, 0], sizes = [128, 4], strides = [1, 1]} : vector<128x16xf32> to vector<128x4xf32>
    %7 = vector.extract_strided_slice %0 {offsets = [0, 4], sizes = [128, 4], strides = [1, 1]} : vector<128x16xf32> to vector<128x4xf32>
    %8 = vector.extract_strided_slice %0 {offsets = [0, 8], sizes = [128, 4], strides = [1, 1]} : vector<128x16xf32> to vector<128x4xf32>
    %9 = vector.extract_strided_slice %0 {offsets = [0, 12], sizes = [128, 4], strides = [1, 1]} : vector<128x16xf32> to vector<128x4xf32>
    %10 = arith.maximumf %6, %7 : vector<128x4xf32>
    %11 = arith.maximumf %8, %9 : vector<128x4xf32>
    %12 = arith.maximumf %10, %11 : vector<128x4xf32>
    %c0_5 = arith.constant 0 : index
    %c0_6 = arith.constant 0 : index
    %13 = vector.load %arg4[%c0_5, %c0_6] : memref<1x4xf32, #tpu.memory_space<vmem>>, vector<1x4xf32>
    %14 = vector.broadcast %13 : vector<1x4xf32> to vector<128x4xf32>
    %15 = arith.mulf %12, %14 : vector<128x4xf32>
    %cst_7 = arith.constant dense<0.000000e+00> : vector<128xf32>
    %16 = vector.multi_reduction <add>, %15, %cst_7 [1] : vector<128x4xf32> to vector<128xf32>
    %17 = vector.shape_cast %16 : vector<128xf32> to vector<128x1xf32>
    %c0_8 = arith.constant 0 : index
    %c0_9 = arith.constant 0 : index
    %18 = vector.load %arg5[%c0_8, %c0_9] : memref<1x1xf32, #tpu.memory_space<vmem>>, vector<1x1xf32>
    %19 = vector.broadcast %18 : vector<1x1xf32> to vector<128x1xf32>
    %20 = arith.addf %17, %19 : vector<128x1xf32>
    %21 = arith.negf %20 : vector<128x1xf32>
    %22 = math.exp %21 : vector<128x1xf32>
    %cst_10 = arith.constant 1.000000e+00 : f32
    %23 = vector.broadcast %cst_10 : f32 to vector<128x1xf32>
    %24 = arith.addf %23, %22 : vector<128x1xf32>
    %25 = arith.divf %23, %24 : vector<128x1xf32>
    %26 = vector.broadcast %25 : vector<128x1xf32> to vector<128x4xf32>
    %27 = arith.mulf %5, %26 : vector<128x4xf32>
    %28 = arith.addf %27, %12 : vector<128x4xf32>
    %c0_11 = arith.constant 0 : index
    %c0_12 = arith.constant 0 : index
    %29 = vector.load %arg6[%c0_11, %c0_12] : memref<128x4xf32, #tpu.memory_space<vmem>>, vector<128x4xf32>
    tpu.vector_store %arg6[%c0_11, %c0_12], %28 {strides = array<i32>} : memref<128x4xf32, #tpu.memory_space<vmem>>, vector<128x4xf32>,
    return
  }
  func.func @transform_0(%arg0: i32) -> (i32, i32) {
    %c0_i32 = arith.constant 0 : i32
    %c0_i32_0 = arith.constant 0 : i32
    return %arg0, %c0_i32 : i32, i32
  }
  func.func @transform_1(%arg0: i32) -> (i32, i32) {
    %c0_i32 = arith.constant 0 : i32
    %c0_i32_0 = arith.constant 0 : i32
    %c0_i32_1 = arith.constant 0 : i32
    return %c0_i32, %c0_i32_0 : i32, i32
  }
  func.func @transform_2(%arg0: i32) -> (i32, i32) {
    %c0_i32 = arith.constant 0 : i32
    %c0_i32_0 = arith.constant 0 : i32
    %c0_i32_1 = arith.constant 0 : i32
    return %c0_i32, %c0_i32_0 : i32, i32
  }
  func.func @transform_3(%arg0: i32) -> (i32, i32) {
    %c0_i32 = arith.constant 0 : i32
    %c0_i32_0 = arith.constant 0 : i32
    %c0_i32_1 = arith.constant 0 : i32
    return %c0_i32, %c0_i32_0 : i32, i32
  }
  func.func @transform_4(%arg0: i32) -> (i32, i32) {
    %c0_i32 = arith.constant 0 : i32
    %c0_i32_0 = arith.constant 0 : i32
    %c0_i32_1 = arith.constant 0 : i32
    return %c0_i32, %c0_i32_0 : i32, i32
  }
  func.func @transform_5(%arg0: i32) -> (i32, i32) {
    %c0_i32 = arith.constant 0 : i32
    %c0_i32_0 = arith.constant 0 : i32
    return %arg0, %c0_i32 : i32, i32
  }
}

</mosaic_0001>

<bundles_post_ra>
// kernel: pddm_forward.1
= control target key start
LH: loop header
LB: loop body
LE: loop exit
PB: predicated region body
PF: predicated region fallthrough
CT: control target
= control target key end

     0   :  { %s864_s22 = smov 124   ;;  %s865_s27 = smov 120   ;;  %vm47_vm0 = vcmask 130048   ;;  %vm408_vm1 = vcmask 31744   ;;  %s1373_s0 = inlined_call_operand.vmem [shape: f32[128,16], index: 0, kind: input, shape index: {}]   ;;  %s1374_s1 = inlined_call_operand.vmem [shape: f32[16,4], index: 1, kind: input, shape index: {}]   ;;  %s1375_s4 = inlined_call_operand.<no memory space> [shape: f32[1,1], index: 4, kind: input, shape index: {}]   ;;  %s1376_s3 = inlined_call_operand.vmem [shape: f32[1,4], index: 3, kind: input, shape index: {}]   ;;  %s1377_s2 = inlined_call_operand.vmem [shape: f32[1,4], index: 2, kind: input, shape index: {}]   ;;  %s1378_s5 = inlined_call_operand.vmem [shape: f32[128,4], index: 5, kind: output, shape index: {}]  }
   0x1   :  { %v900_v0 = vld [vmem:[%s1373_s0] sm:$0xff]  ;;  %v905_v1 = vld [vmem:[%s1373_s0 + $0x10] sm:$0xff]  ;;  %v912_v2 = vld [vmem:[%s1373_s0 + $0x8] sm:$0xff]  ;;  %v10_v48 = vstv %s1375_s4 }
   0x2   :  { %241 = vrot.lane.b32.xlu0 %v900_v0, %s864_s22  ;;  %245 = vrot.lane.b32.xlu1 %v905_v1, %s864_s22  ;;  %v917_v3 = vld [vmem:[%s1373_s0 + $0x18] sm:$0xff]  ;;  %v924_v4 = vld [vmem:[%s1373_s0 + $0x20] sm:$0xff]  ;;  %11 = vst [vmem:[#allocation2] sm:$0x1] %v10_v48 }
   0x3   :  { %v929_v5 = vld [vmem:[%s1373_s0 + $0x28] sm:$0xff]  ;;  %v936_v6 = vld [vmem:[%s1373_s0 + $0x30] sm:$0xff]  ;;  %v941_v7 = vld [vmem:[%s1373_s0 + $0x38] sm:$0xff]  ;;  %765 = vmatprep.mubr.msk.f32.mxu0 %vm47_vm0, %v900_v0 }
   0x4   :  { %v948_v8 = vld [vmem:[%s1373_s0 + $0x40] sm:$0xff]  ;;  %v953_v9 = vld [vmem:[%s1373_s0 + $0x48] sm:$0xff]  ;;  %v960_v10 = vld [vmem:[%s1373_s0 + $0x50] sm:$0xff] }
   0x5   :  { %v965_v11 = vld [vmem:[%s1373_s0 + $0x58] sm:$0xff]  ;;  %v972_v12 = vld [vmem:[%s1373_s0 + $0x60] sm:$0xff]  ;;  %v977_v13 = vld [vmem:[%s1373_s0 + $0x68] sm:$0xff]  ;;  %777 = vmatprep.mubr.msk.f32.mxu1 %vm47_vm0, %v948_v8 }
   0x6   :  { %243 = vrot.lane.b32.xlu0 %v912_v2, %s864_s22  ;;  %247 = vrot.lane.b32.xlu1 %v917_v3, %s864_s22  ;;  %v984_v14 = vld [vmem:[%s1373_s0 + $0x70] sm:$0xff]  ;;  %v989_v15 = vld [vmem:[%s1373_s0 + $0x78] sm:$0xff] }
   0x7   :  { %v38_v46 = vld [vmem:[%s1374_s1] sm:$0xff]  ;;  %v39_v47 = vld [vmem:[%s1374_s1 + $0x8] sm:$0xff] }
   0x8   :  { %v789_v50 = vpack.c.bf16 %v39_v47, %v38_v46  ;;  %v1117_v53 = vld [vmem:[%s1376_s3] ss:$0 sm:$0xff] }
   0xa   :  { %249 = vrot.lane.b32.xlu0 %v924_v4, %s864_s22  ;;  %251 = vrot.lane.b32.xlu1 %v929_v5, %s864_s22 }
   0xb   :  { %790 = vmatprep.subr.bf16.mxu0 %v789_v50  ;;  %793 = vmatprep.subr.bf16.mxu1 %v789_v50 }
   0xc   :  { %792 = vmatpush3.bf16.msra.mxu0 %v789_v50  ;;  %794 = vmatpush3.bf16.msra.mxu1 %v789_v50 }
   0xe   :  { %253 = vrot.lane.b32.xlu0 %v936_v6, %s864_s22  ;;  %255 = vrot.lane.b32.xlu1 %v941_v7, %s864_s22 }
   0xf   :  { %766 = vmatmul.mubr.msk.f32.vlgmr.msra.gmra.mrb[0].mxu0 %vm47_vm0, %v912_v2  ;;  %778 = vmatmul.mubr.msk.f32.vlgmr.msra.gmra.mrb[0].mxu1 %vm47_vm0, %v953_v9 }
  0x10   :  { %768 = vmatprep.mubr.msk.f32.mxu0 %vm47_vm0, %v905_v1  ;;  %780 = vmatprep.mubr.msk.f32.mxu1 %vm47_vm0, %v960_v10 }
  0x12   :  { %257 = vrot.lane.b32.xlu0 %v948_v8, %s864_s22  ;;  %259 = vrot.lane.b32.xlu1 %v953_v9, %s864_s22 }
  0x13   :  { %769 = vmatmul.mubr.msk.f32.gmra.mrb[2].mxu0 %vm47_vm0, %v917_v3  ;;  %781 = vmatmul.mubr.msk.f32.gmra.mrb[2].mxu1 %vm47_vm0, %v965_v11 }
  0x14   :  { %771 = vmatprep.mubr.msk.f32.mxu0 %vm47_vm0, %v924_v4  ;;  %783 = vmatprep.mubr.msk.f32.mxu1 %vm47_vm0, %v972_v12 }
  0x16   :  { %261 = vrot.lane.b32.xlu0 %v960_v10, %s864_s22  ;;  %263 = vrot.lane.b32.xlu1 %v965_v11, %s864_s22 }
  0x17   :  { %772 = vmatmul.mubr.msk.f32.gmra.mrb[4].mxu0 %vm47_vm0, %v929_v5  ;;  %784 = vmatmul.mubr.msk.f32.gmra.mrb[4].mxu1 %vm47_vm0, %v977_v13 }
  0x18   :  { %774 = vmatprep.mubr.msk.f32.mxu0 %vm47_vm0, %v936_v6  ;;  %786 = vmatprep.mubr.msk.f32.mxu1 %vm47_vm0, %v984_v14 }
  0x1a   :  { %265 = vrot.lane.b32.xlu0 %v972_v12, %s864_s22  ;;  %267 = vrot.lane.b32.xlu1 %v977_v13, %s864_s22 }
  0x1b   :  { %775 = vmatmul.mubr.msk.f32.gmra.mrb[6].mxu0 %vm47_vm0, %v941_v7  ;;  %787 = vmatmul.mubr.msk.f32.gmra.mrb[6].mxu1 %vm47_vm0, %v989_v15 }
  0x1e   :  { %269 = vrot.lane.b32.xlu0 %v984_v14, %s864_s22  ;;  %271 = vrot.lane.b32.xlu1 %v989_v15, %s864_s22 }
  0x74   :  { %v242_v16 = vpop.permute.xlu0 %241  ;;  %v246_v17 = vpop.permute.xlu1 %245 }
  0x75   :  { %v994_v18 = vmax.f32 %v900_v0, %v242_v16  ;;  %v999_v19 = vmax.f32 %v905_v1, %v246_v17 }
  0x77   :  { %321 = vrot.lane.b32.xlu0 %v994_v18, %s865_s27 }
  0x78   :  { %v244_v20 = vpop.permute.xlu0 %243  ;;  %v248_v21 = vpop.permute.xlu1 %247 }
  0x79   :  { %v1002_v22 = vmax.f32 %v912_v2, %v244_v20  ;;  %v1009_v23 = vmax.f32 %v917_v3, %v248_v21 }
  0x7b   :  { %325 = vrot.lane.b32.xlu0 %v999_v19, %s865_s27  ;;  %323 = vrot.lane.b32.xlu1 %v1002_v22, %s865_s27 }
  0x7c   :  { %v250_v24 = vpop.permute.xlu0 %249  ;;  %v252_v25 = vpop.permute.xlu1 %251 }
  0x7d   :  { %v1012_v26 = vmax.f32 %v924_v4, %v250_v24  ;;  %v1019_v27 = vmax.f32 %v929_v5, %v252_v25 }
  0x7f   :  { %327 = vrot.lane.b32.xlu1 %v1009_v23, %s865_s27  ;;  %329 = vrot.lane.b32.xlu0 %v1012_v26, %s865_s27 }
  0x80   :  { %v254_v28 = vpop.permute.xlu0 %253  ;;  %v256_v29 = vpop.permute.xlu1 %255 }
  0x81   :  { %v1022_v30 = vmax.f32 %v936_v6, %v254_v28  ;;  %v1029_v31 = vmax.f32 %v941_v7, %v256_v29 }
  0x83   :  { %331 = vrot.lane.b32.xlu1 %v1019_v27, %s865_s27  ;;  %333 = vrot.lane.b32.xlu0 %v1022_v30, %s865_s27 }
  0x84   :  { %v258_v32 = vpop.permute.xlu0 %257  ;;  %v260_v33 = vpop.permute.xlu1 %259 }
  0x85   :  { %v1032_v34 = vmax.f32 %v948_v8, %v258_v32  ;;  %v1039_v35 = vmax.f32 %v953_v9, %v260_v33 }
  0x87   :  { %335 = vrot.lane.b32.xlu1 %v1029_v31, %s865_s27  ;;  %337 = vrot.lane.b32.xlu0 %v1032_v34, %s865_s27 }
  0x88   :  { %v262_v36 = vpop.permute.xlu0 %261  ;;  %v264_v37 = vpop.permute.xlu1 %263 }
  0x89   :  { %v1042_v38 = vmax.f32 %v960_v10, %v262_v36  ;;  %v1049_v39 = vmax.f32 %v965_v11, %v264_v37 }
  0x8b   :  { %339 = vrot.lane.b32.xlu1 %v1039_v35, %s865_s27  ;;  %341 = vrot.lane.b32.xlu0 %v1042_v38, %s865_s27 }
  0x8c   :  { %v266_v40 = vpop.permute.xlu0 %265  ;;  %v268_v41 = vpop.permute.xlu1 %267 }
  0x8d   :  { %v1052_v42 = vmax.f32 %v972_v12, %v266_v40  ;;  %v1059_v43 = vmax.f32 %v977_v13, %v268_v41 }
  0x8f   :  { %343 = vrot.lane.b32.xlu1 %v1049_v39, %s865_s27  ;;  %345 = vrot.lane.b32.xlu0 %v1052_v42, %s865_s27 }
  0x90   :  { %v270_v44 = vpop.permute.xlu0 %269  ;;  %v272_v45 = vpop.permute.xlu1 %271 }
  0x91   :  { %v1075_v49 = vmax.f32 %v984_v14, %v270_v44  ;;  %v1082_v51 = vmax.f32 %v989_v15, %v272_v45 }
  0x93   :  { %347 = vrot.lane.b32.xlu1 %v1059_v43, %s865_s27  ;;  %349 = vrot.lane.b32.xlu0 %v1075_v49, %s865_s27 }
  0x97   :  { %351 = vrot.lane.b32.xlu1 %v1082_v51, %s865_s27 }
  0xe9   :  { %v322_v52 = vpop.permute.xlu0 %321 }
  0xea   :  { %v1120_v54 = vmax.f32 %v994_v18, %v322_v52 }
  0xec   :  { %v392_v55 = vmul.f32 %v1117_v53, %v1120_v54 }
  0xed   :  { %v324_v56 = vpop.permute.xlu1 %323  ;;  %v326_v57 = vpop.permute.xlu0 %325 }
  0xee   :  { %v1125_v58 = vmax.f32 %v1002_v22, %v324_v56  ;;  %v1128_v59 = vmax.f32 %v999_v19, %v326_v57  ;;  %v409_v60 = vsel %vm408_vm1, %v392_v55, 0.0  ;;  %v866_v56 = vmov 0   ;;  %v1215_v57 = vpop.f32.mrb[0].mxu0 }
  0xef   :  { %410 = vadd.xlane.f32.xlu0 %v409_v60  ;;  %798 = vset.pattern.permute.xlu1 %v866_v56  ;;  %v1217_v60 = vpop.f32.mrb[1].mxu0 }
  0xf0   :  { %v393_v61 = vmul.f32 %v1117_v53, %v1125_v58  ;;  %v394_v62 = vmul.f32 %v1117_v53, %v1128_v59  ;;  %799 = vset.pattern.permute.xlu0 %v866_v56 }
  0xf1   :  { %v328_v63 = vpop.permute.xlu1 %327  ;;  %v330_v0 = vpop.permute.xlu0 %329 }
  0xf2   :  { %v1136_v1 = vmax.f32 %v1009_v23, %v328_v63  ;;  %v1139_v2 = vmax.f32 %v1012_v26, %v330_v0  ;;  %v412_v3 = vsel %vm408_vm1, %v393_v61, 0.0  ;;  %v415_v4 = vsel %vm408_vm1, %v394_v62, 0.0 }
  0xf3   :  { %413 = vadd.xlane.f32.xlu1 %v412_v3  ;;  %416 = vadd.xlane.f32.xlu0 %v415_v4 }
  0xf4   :  { %v395_v5 = vmul.f32 %v1117_v53, %v1136_v1  ;;  %v396_v6 = vmul.f32 %v1117_v53, %v1139_v2 }
  0xf5   :  { %v332_v7 = vpop.permute.xlu1 %331  ;;  %v334_v8 = vpop.permute.xlu0 %333 }
  0xf6   :  { %v1148_v9 = vmax.f32 %v1019_v27, %v332_v7  ;;  %v1151_v10 = vmax.f32 %v1022_v30, %v334_v8  ;;  %v418_v11 = vsel %vm408_vm1, %v395_v5, 0.0  ;;  %v421_v12 = vsel %vm408_vm1, %v396_v6, 0.0 }
  0xf7   :  { %419 = vadd.xlane.f32.xlu0 %v418_v11  ;;  %422 = vadd.xlane.f32.xlu1 %v421_v12 }
  0xf8   :  { %v397_v13 = vmul.f32 %v1117_v53, %v1148_v9  ;;  %v398_v14 = vmul.f32 %v1117_v53, %v1151_v10 }
  0xf9   :  { %v336_v15 = vpop.permute.xlu1 %335  ;;  %v338_v16 = vpop.permute.xlu0 %337 }
  0xfa   :  { %v1160_v17 = vmax.f32 %v1029_v31, %v336_v15  ;;  %v1163_v18 = vmax.f32 %v1032_v34, %v338_v16  ;;  %v424_v19 = vsel %vm408_vm1, %v397_v13, 0.0  ;;  %v427_v20 = vsel %vm408_vm1, %v398_v14, 0.0 }
  0xfb   :  { %425 = vadd.xlane.f32.xlu0 %v424_v19  ;;  %428 = vadd.xlane.f32.xlu1 %v427_v20 }
  0xfc   :  { %v399_v21 = vmul.f32 %v1117_v53, %v1160_v17  ;;  %v400_v22 = vmul.f32 %v1117_v53, %v1163_v18 }
  0xfd   :  { %v340_v23 = vpop.permute.xlu1 %339  ;;  %v342_v24 = vpop.permute.xlu0 %341 }
  0xfe   :  { %v1172_v25 = vmax.f32 %v1039_v35, %v340_v23  ;;  %v1175_v26 = vmax.f32 %v1042_v38, %v342_v24  ;;  %v430_v27 = vsel %vm408_vm1, %v399_v21, 0.0  ;;  %v433_v28 = vsel %vm408_vm1, %v400_v22, 0.0 }
  0xff   :  { %431 = vadd.xlane.f32.xlu0 %v430_v27  ;;  %434 = vadd.xlane.f32.xlu1 %v433_v28 }
 0x100   :  { %v401_v29 = vmul.f32 %v1117_v53, %v1172_v25  ;;  %v402_v30 = vmul.f32 %v1117_v53, %v1175_v26 }
 0x101   :  { %v344_v31 = vpop.permute.xlu1 %343  ;;  %v346_v32 = vpop.permute.xlu0 %345 }
 0x102   :  { %v1184_v33 = vmax.f32 %v1049_v39, %v344_v31  ;;  %v1187_v34 = vmax.f32 %v1052_v42, %v346_v32  ;;  %v436_v35 = vsel %vm408_vm1, %v401_v29, 0.0  ;;  %v439_v36 = vsel %vm408_vm1, %v402_v30, 0.0 }
 0x103   :  { %437 = vadd.xlane.f32.xlu0 %v436_v35  ;;  %440 = vadd.xlane.f32.xlu1 %v439_v36 }
 0x104   :  { %v403_v37 = vmul.f32 %v1117_v53, %v1184_v33  ;;  %v404_v38 = vmul.f32 %v1117_v53, %v1187_v34 }
 0x105   :  { %v348_v40 = vpop.permute.xlu1 %347  ;;  %v350_v41 = vpop.permute.xlu0 %349 }
 0x106   :  { %v1196_v39 = vmax.f32 %v1059_v43, %v348_v40  ;;  %v1199_v42 = vmax.f32 %v1075_v49, %v350_v41  ;;  %v442_v44 = vsel %vm408_vm1, %v403_v37, 0.0  ;;  %v445_v45 = vsel %vm408_vm1, %v404_v38, 0.0 }
 0x107   :  { %443 = vadd.xlane.f32.xlu0 %v442_v44  ;;  %446 = vadd.xlane.f32.xlu1 %v445_v45 }
 0x108   :  { %v405_v46 = vmul.f32 %v1117_v53, %v1196_v39  ;;  %v406_v47 = vmul.f32 %v1117_v53, %v1199_v42 }
 0x109   :  { %v352_v48 = vpop.permute.xlu1 %351 }
 0x10a   :  { %v1208_v50 = vmax.f32 %v1082_v51, %v352_v48  ;;  %v448_v43 = vsel %vm408_vm1, %v405_v46, 0.0  ;;  %v451_v49 = vsel %vm408_vm1, %v406_v47, 0.0  ;;  %v1219_v51 = vld [vmem:[#allocation2] ss:$0 sm:$0xff] }
 0x10b   :  { %449 = vadd.xlane.f32.xlu0 %v448_v43  ;;  %452 = vadd.xlane.f32.xlu1 %v451_v49 }
 0x10c   :  { %v407_v52 = vmul.f32 %v1117_v53, %v1208_v50 }
 0x10e   :  { %v454_v55 = vsel %vm408_vm1, %v407_v52, 0.0 }
 0x10f   :  { %455 = vadd.xlane.f32.xlu0 %v454_v55 }
 0x17c   :  { %v411_v61 = vpop.xlane.xlu0 %410 }
 0x17d   :  { %v464_v62 = vadd.f32 %v1219_v51, %v411_v61 }
 0x17f   :  { %v727_v63 = vmul.f32 -1.442695, %v464_v62 }
 0x180   :  { %v414_v0 = vpop.xlane.xlu1 %413  ;;  %v417_v3 = vpop.xlane.xlu0 %416 }
 0x181   :  { %800 = vpow2.f32 %v727_v63  ;;  %v465_v53 = vadd.f32 %v1219_v51, %v414_v0  ;;  %v466_v4 = vadd.f32 %v1219_v51, %v417_v3 }
 0x183   :  { %v728_v5 = vmul.f32 -1.442695, %v465_v53  ;;  %v729_v6 = vmul.f32 -1.442695, %v466_v4 }
 0x184   :  { %v423_v7 = vpop.xlane.xlu1 %422  ;;  %v420_v8 = vpop.xlane.xlu0 %419 }
 0x185   :  { %802 = vpow2.f32 %v728_v5  ;;  %v468_v11 = vadd.f32 %v1219_v51, %v423_v7  ;;  %v467_v12 = vadd.f32 %v1219_v51, %v420_v8 }
 0x186   :  { %804 = vpow2.f32 %v729_v6 }
 0x187   :  { %v731_v13 = vmul.f32 -1.442695, %v468_v11  ;;  %v730_v14 = vmul.f32 -1.442695, %v467_v12  ;;  %v1235_v12 = vpop.f32.mrb[2].mxu0 }
 0x188   :  { %v429_v15 = vpop.xlane.xlu1 %428  ;;  %v426_v16 = vpop.xlane.xlu0 %425 }
 0x189   :  { %806 = vpow2.f32 %v731_v13  ;;  %v470_v19 = vadd.f32 %v1219_v51, %v429_v15  ;;  %v469_v20 = vadd.f32 %v1219_v51, %v426_v16  ;;  %v1238_v16 = vpop.f32.mrb[3].mxu0 }
 0x18a   :  { %808 = vpow2.f32 %v730_v14 }
 0x18b   :  { %v801_v21 = vpop.eup %800  ;;  %v732_v22 = vmul.f32 -1.442695, %v469_v20  ;;  %v733_v28 = vmul.f32 -1.442695, %v470_v19 }
 0x18c   :  { %v528_v23 = vadd.f32 1.0, %v801_v21  ;;  %v435_v24 = vpop.xlane.xlu1 %434  ;;  %v432_v27 = vpop.xlane.xlu0 %431 }
 0x18d   :  { %v471_v29 = vadd.f32 %v1219_v51, %v432_v27  ;;  %v472_v40 = vadd.f32 %v1219_v51, %v435_v24 }
 0x18e   :  { %810 = vrcp.f32 %v528_v23 }
 0x18f   :  { %v803_v30 = vpop.eup %802  ;;  %812 = vpow2.f32 %v732_v22  ;;  %v734_v41 = vmul.f32 -1.442695, %v471_v29  ;;  %v735_v52 = vmul.f32 -1.442695, %v472_v40 }
 0x190   :  { %v805_v31 = vpop.eup %804  ;;  %v529_v32 = vadd.f32 1.0, %v803_v30  ;;  %v441_v35 = vpop.xlane.xlu1 %440  ;;  %814 = vpow2.f32 %v733_v28 }
 0x191   :  { %v438_v36 = vpop.xlane.xlu0 %437  ;;  %v530_v37 = vadd.f32 1.0, %v805_v31  ;;  %v474_v38 = vadd.f32 %v1219_v51, %v441_v35  ;;  %v1241_v35 = vpop.f32.mrb[4].mxu0 }
 0x192   :  { %816 = vrcp.f32 %v529_v32  ;;  %v473_v55 = vadd.f32 %v1219_v51, %v438_v36 }
 0x193   :  { %v807_v44 = vpop.eup %806  ;;  %818 = vrcp.f32 %v530_v37  ;;  %v737_v45 = vmul.f32 -1.442695, %v474_v38  ;;  %v1243_v38 = vpop.f32.mrb[5].mxu0 }
 0x194   :  { %v809_v46 = vpop.eup %808  ;;  %v447_v47 = vpop.xlane.xlu1 %446  ;;  %v532_v56 = vadd.f32 1.0, %v807_v44  ;;  %v736_v5 = vmul.f32 -1.442695, %v473_v55 }
 0x195   :  { %v444_v48 = vpop.xlane.xlu0 %443  ;;  %v531_v43 = vadd.f32 1.0, %v809_v46  ;;  %820 = vpow2.f32 %v737_v45  ;;  %v476_v49 = vadd.f32 %v1219_v51, %v447_v47  ;;  %v1245_v46 = vpop.f32.mrb[0].mxu1 }
 0x196   :  { %822 = vpow2.f32 %v734_v41  ;;  %v475_v53 = vadd.f32 %v1219_v51, %v444_v48 }
 0x197   :  { %824 = vrcp.f32 %v531_v43  ;;  %v739_v61 = vmul.f32 -1.442695, %v476_v49  ;;  %v1247_v43 = vpop.f32.mrb[1].mxu1 }
 0x198   :  { %v811_v62 = vpop.eup %810  ;;  %v453_v63 = vpop.xlane.xlu1 %452  ;;  %v738_v14 = vmul.f32 -1.442695, %v475_v53 }
 0x199   :  { %v450_v0 = vpop.xlane.xlu0 %449  ;;  %v813_v3 = vpop.eup %812  ;;  %826 = vpow2.f32 %v739_v61  ;;  %v478_v4 = vadd.f32 %v1219_v51, %v453_v63  ;;  %578 = vperm.xlu1 %798, %v811_v62  }
 0x19a   :  { %828 = vpow2.f32 %v735_v52  ;;  %v815_v6 = vpop.eup %814  ;;  %v533_v7 = vadd.f32 1.0, %v813_v3  ;;  %v477_v15 = vadd.f32 %v1219_v51, %v450_v0  ;;  %v1249_v52 = vpop.f32.mrb[6].mxu0 }
 0x19b   :  { %830 = vrcp.f32 %v532_v56  ;;  %v741_v8 = vmul.f32 -1.442695, %v478_v4  ;;  %v534_v21 = vadd.f32 1.0, %v815_v6  ;;  %v1251_v55 = vpop.f32.mrb[2].mxu1  ;;  %v1253_v61 = vpop.f32.mrb[7].mxu0 }
 0x19c   :  { %v817_v11 = vpop.eup %816  ;;  %v740_v27 = vmul.f32 -1.442695, %v477_v15  ;;  %v212_v62 = vpop.f32.mrb[3].mxu1 }
 0x19d   :  { %v819_v13 = vpop.eup %818  ;;  %832 = vpow2.f32 %v741_v8  ;;  %583 = vperm.xlu0 %799, %v817_v11   ;;  %v456_v19 = vpop.xlane.xlu0 %455 }
 0x19e   :  { %834 = vpow2.f32 %v736_v5  ;;  %588 = vperm.xlu1 %798, %v819_v13   ;;  %v479_v28 = vadd.f32 %v1219_v51, %v456_v19  ;;  %v1255_v53 = vpop.f32.mrb[4].mxu1 }
 0x19f   :  { %v821_v20 = vpop.eup %820  ;;  %836 = vrcp.f32 %v533_v7  ;;  %v222_v5 = vpop.f32.mrb[5].mxu1 }
 0x1a0   :  { %v823_v22 = vpop.eup %822  ;;  %v538_v23 = vadd.f32 1.0, %v821_v20  ;;  %838 = vpow2.f32 %v738_v14  ;;  %v742_v37 = vmul.f32 -1.442695, %v479_v28  ;;  %v1257_v11 = vpop.f32.mrb[6].mxu1 }
 0x1a1   :  { %v825_v24 = vpop.eup %824  ;;  %v535_v30 = vadd.f32 1.0, %v823_v22  ;;  %v232_v14 = vpop.f32.mrb[7].mxu1 }
 0x1a2   :  { %840 = vrcp.f32 %v538_v23  ;;  %593 = vperm.xlu1 %798, %v825_v24   ;;  %v1262_v23 = vld [vmem:[%s1377_s2] ss:$0 sm:$0xff] }
 0x1a3   :  { %v827_v29 = vpop.eup %826  ;;  %842 = vrcp.f32 %v534_v21  ;;  %v163_v24 = vadd.f32 %v1262_v23, %v1217_v60  ;;  %v168_v28 = vadd.f32 %v1215_v57, %v1262_v23  ;;  %v178_v60 = vadd.f32 %v1235_v12, %v1262_v23 }
 0x1a4   :  { %v829_v31 = vpop.eup %828  ;;  %v540_v32 = vadd.f32 1.0, %v827_v29  ;;  %844 = vpow2.f32 %v740_v27  ;;  %v183_v12 = vadd.f32 %v1262_v23, %v1243_v38  ;;  %v193_v38 = vadd.f32 %v1262_v23, %v1253_v61 }
 0x1a5   :  { %v831_v36 = vpop.eup %830  ;;  %v536_v41 = vadd.f32 1.0, %v829_v31 }
 0x1a6   :  { %846 = vrcp.f32 %v540_v32  ;;  %598 = vperm.xlu1 %798, %v831_v36  }
 0x1a7   :  { %v833_v40 = vpop.eup %832  ;;  %848 = vrcp.f32 %v535_v30  ;;  %v173_v30 = vadd.f32 %v1262_v23, %v1238_v16 }
 0x1a8   :  { %v835_v51 = vpop.eup %834  ;;  %v542_v44 = vadd.f32 1.0, %v833_v40  ;;  %850 = vpow2.f32 %v742_v37 }
 0x1a9   :  { %v837_v45 = vpop.eup %836  ;;  %v537_v48 = vadd.f32 1.0, %v835_v51 }
 0x1aa   :  { %852 = vrcp.f32 %v542_v44  ;;  %603 = vperm.xlu1 %798, %v837_v45   ;;  %v839_v47 = vpop.eup %838 }
 0x1ab   :  { %854 = vrcp.f32 %v536_v41  ;;  %v539_v0 = vadd.f32 1.0, %v839_v47 }
 0x1ac   :  { %v841_v49 = vpop.eup %840  ;;  %856 = vrcp.f32 %v537_v48  ;;  %v213_v48 = vadd.f32 %v1262_v23, %v212_v62 }
 0x1ad   :  { %v843_v56 = vpop.eup %842  ;;  %628 = vperm.xlu0 %799, %v841_v49   ;;  %858 = vrcp.f32 %v539_v0  ;;  %v223_v0 = vadd.f32 %v1262_v23, %v222_v5 }
 0x1ae   :  { %608 = vperm.xlu1 %798, %v843_v56   ;;  %v845_v63 = vpop.eup %844 }
 0x1af   :  { %v541_v7 = vadd.f32 1.0, %v845_v63 }
 0x1b0   :  { %v847_v3 = vpop.eup %846 }
 0x1b1   :  { %v849_v4 = vpop.eup %848  ;;  %638 = vperm.xlu0 %799, %v847_v3   ;;  %860 = vrcp.f32 %v541_v7  ;;  %v203_v7 = vadd.f32 %v1262_v23, %v1247_v43  ;;  %v208_v43 = vadd.f32 %v1245_v46, %v1262_v23 }
 0x1b2   :  { %613 = vperm.xlu1 %798, %v849_v4   ;;  %v851_v6 = vpop.eup %850 }
 0x1b3   :  { %v543_v15 = vadd.f32 1.0, %v851_v6  ;;  %v233_v6 = vadd.f32 %v1262_v23, %v232_v14 }
 0x1b4   :  { %v853_v8 = vpop.eup %852 }
 0x1b5   :  { %v855_v13 = vpop.eup %854  ;;  %648 = vperm.xlu0 %799, %v853_v8   ;;  %862 = vrcp.f32 %v543_v15 }
 0x1b6   :  { %618 = vperm.xlu1 %798, %v855_v13   ;;  %v857_v19 = vpop.eup %856 }
 0x1b7   :  { %v859_v20 = vpop.eup %858 }
 0x1ba   :  { %623 = vperm.xlu1 %798, %v857_v19  }
 0x1bb   :  { %v861_v21 = vpop.eup %860 }
 0x1be   :  { %633 = vperm.xlu1 %798, %v859_v20   ;;  %v218_v20 = vadd.f32 %v1251_v55, %v1262_v23 }
 0x1bf   :  { %v863_v22 = vpop.eup %862 }
 0x1c2   :  { %643 = vperm.xlu1 %798, %v861_v21  }
 0x1c6   :  { %653 = vperm.xlu1 %798, %v863_v22  }
 0x218   :  { %v579_v27 = vpop.permute.xlu1 %578 }
 0x219   :  { %v656_v29 = vmul.f32 %v579_v27, %v163_v24  ;;  %v238_v27 = vadd.f32 %v1257_v11, %v1262_v23 }
 0x21b   :  { %v672_v31 = vadd.f32 %v656_v29, %v1120_v54 }
 0x21c   :  { %v584_v32 = vpop.permute.xlu0 %583 }
 0x21d   :  { %688 = vst.msk [vmem:[%s1378_s5] sm:$0xff] %vm408_vm1, %v672_v31  ;;  %v589_v36 = vpop.permute.xlu1 %588  ;;  %v657_v37 = vmul.f32 %v584_v32, %v168_v28 }
 0x21e   :  { %v658_v40 = vmul.f32 %v589_v36, %v173_v30 }
 0x21f   :  { %v673_v57 = vadd.f32 %v657_v37, %v1125_v58 }
 0x220   :  { %v674_v41 = vadd.f32 %v658_v40, %v1128_v59  ;;  %v188_v59 = vadd.f32 %v1241_v35, %v1262_v23 }
 0x221   :  { %689 = vst.msk [vmem:[%s1378_s5 + $0x8] sm:$0xff] %vm408_vm1, %v673_v57  ;;  %v594_v54 = vpop.permute.xlu1 %593 }
 0x222   :  { %690 = vst.msk [vmem:[%s1378_s5 + $0x10] sm:$0xff] %vm408_vm1, %v674_v41  ;;  %v659_v16 = vmul.f32 %v594_v54, %v178_v60 }
 0x224   :  { %v675_v51 = vadd.f32 %v659_v16, %v1136_v1 }
 0x225   :  { %v599_v58 = vpop.permute.xlu1 %598 }
 0x226   :  { %691 = vst.msk [vmem:[%s1378_s5 + $0x18] sm:$0xff] %vm408_vm1, %v675_v51  ;;  %v660_v44 = vmul.f32 %v599_v58, %v183_v12 }
 0x228   :  { %v676_v45 = vadd.f32 %v660_v44, %v1139_v2  ;;  %v198_v2 = vadd.f32 %v1249_v52, %v1262_v23 }
 0x229   :  { %v604_v47 = vpop.permute.xlu1 %603 }
 0x22a   :  { %692 = vst.msk [vmem:[%s1378_s5 + $0x20] sm:$0xff] %vm408_vm1, %v676_v45  ;;  %v661_v1 = vmul.f32 %v604_v47, %v188_v59 }
 0x22c   :  { %v677_v49 = vadd.f32 %v661_v1, %v1148_v9  ;;  %v629_v56 = vpop.permute.xlu0 %628 }
 0x22d   :  { %v609_v63 = vpop.permute.xlu1 %608  ;;  %v666_v35 = vmul.f32 %v629_v56, %v213_v48 }
 0x22e   :  { %693 = vst.msk [vmem:[%s1378_s5 + $0x28] sm:$0xff] %vm408_vm1, %v677_v49  ;;  %v662_v62 = vmul.f32 %v609_v63, %v193_v38 }
 0x22f   :  { %v682_v3 = vadd.f32 %v666_v35, %v1175_v26 }
 0x230   :  { %v678_v61 = vadd.f32 %v662_v62, %v1151_v10  ;;  %v639_v4 = vpop.permute.xlu0 %638 }
 0x231   :  { %698 = vst.msk [vmem:[%s1378_s5 + $0x50] sm:$0xff] %vm408_vm1, %v682_v3  ;;  %v614_v9 = vpop.permute.xlu1 %613  ;;  %v668_v5 = vmul.f32 %v639_v4, %v223_v0 }
 0x232   :  { %694 = vst.msk [vmem:[%s1378_s5 + $0x30] sm:$0xff] %vm408_vm1, %v678_v61  ;;  %v663_v26 = vmul.f32 %v614_v9, %v198_v2 }
 0x233   :  { %v684_v10 = vadd.f32 %v668_v5, %v1187_v34 }
 0x234   :  { %v679_v52 = vadd.f32 %v663_v26, %v1160_v17  ;;  %v649_v8 = vpop.permute.xlu0 %648 }
 0x235   :  { %700 = vst.msk [vmem:[%s1378_s5 + $0x60] sm:$0xff] %vm408_vm1, %v684_v10  ;;  %v619_v13 = vpop.permute.xlu1 %618  ;;  %v670_v14 = vmul.f32 %v649_v8, %v233_v6 }
 0x236   :  { %695 = vst.msk [vmem:[%s1378_s5 + $0x38] sm:$0xff] %vm408_vm1, %v679_v52  ;;  %v664_v15 = vmul.f32 %v619_v13, %v203_v7 }
 0x237   :  { %v686_v34 = vadd.f32 %v670_v14, %v1199_v42 }
 0x238   :  { %v680_v17 = vadd.f32 %v664_v15, %v1163_v18  ;;  %v228_v18 = vadd.f32 %v1255_v53, %v1262_v23 }
 0x239   :  { %702 = vst.msk [vmem:[%s1378_s5 + $0x70] sm:$0xff] %vm408_vm1, %v686_v34  ;;  %v624_v19 = vpop.permute.xlu1 %623 }
 0x23a   :  { %696 = vst.msk [vmem:[%s1378_s5 + $0x40] sm:$0xff] %vm408_vm1, %v680_v17  ;;  %v665_v46 = vmul.f32 %v624_v19, %v208_v43 }
 0x23c   :  { %v681_v21 = vadd.f32 %v665_v46, %v1172_v25 }
 0x23d   :  { %v634_v42 = vpop.permute.xlu1 %633 }
 0x23e   :  { %697 = vst.msk [vmem:[%s1378_s5 + $0x48] sm:$0xff] %vm408_vm1, %v681_v21  ;;  %v667_v22 = vmul.f32 %v634_v42, %v218_v20 }
 0x240   :  { %v683_v55 = vadd.f32 %v667_v22, %v1184_v33 }
 0x241   :  { %v644_v24 = vpop.permute.xlu1 %643 }
 0x242   :  { %699 = vst.msk [vmem:[%s1378_s5 + $0x58] sm:$0xff] %vm408_vm1, %v683_v55  ;;  %v669_v25 = vmul.f32 %v644_v24, %v228_v18 }
 0x244   :  { %v685_v53 = vadd.f32 %v669_v25, %v1196_v39 }
 0x245   :  { %v654_v28 = vpop.permute.xlu1 %653 }
 0x246   :  { %701 = vst.msk [vmem:[%s1378_s5 + $0x68] sm:$0xff] %vm408_vm1, %v685_v53  ;;  %v671_v29 = vmul.f32 %v654_v28, %v238_v27 }
 0x248   :  { %v687_v33 = vadd.f32 %v671_v29, %v1208_v50 }
 0x24a   :  { %703 = vst.msk [vmem:[%s1378_s5 + $0x78] sm:$0xff] %vm408_vm1, %v687_v33 }

</bundles_post_ra>
